<compile_context>
chip_gen: v7x
topology: tpu7x:2x2x1
jax: 0.10.0
libtpu: 0.0.40
codegen_flags: <defaults>
</compile_context>

<pallas_src>
from functools import partial

import jax
import jax.numpy as jnp
from jax.experimental import pallas as pl
from jax.experimental.pallas import tpu as pltpu


def _round_up(x, m):
    return ((x + m - 1) // m) * m


# --------------------------------------------------------------------------- #
# Fused Pallas kernel: all LSTM layers/directions + Linear head in one call
# --------------------------------------------------------------------------- #
def _make_fused_kernel(num_layers, hidden_size, st_pad):
    H = hidden_size
    H2 = 2 * H                     # fwd|bwd concatenated feature width
    ST = num_layers * H2           # total state width (before lane padding)
    n_in = 3 + 2 * num_layers + 2  # x, h, c, per-layer (W_stacked, bias), lin_w, lin_b

    def kernel(*refs):
        x_ref, h_ref, c_ref = refs[0], refs[1], refs[2]
        layer_refs = refs[3:3 + 2 * num_layers]
        lin_w_ref = refs[3 + 2 * num_layers]
        lin_b_ref = refs[4 + 2 * num_layers]
        pred_ref = refs[n_in]
        h_out_ref = refs[n_in + 1]
        c_out_ref = refs[n_in + 2]

        # Read both state slabs ONCE, before any (aliased) output write.
        h_all = h_ref[...]                                  # (B_pad, ST_pad) f32
        c_all = c_ref[...]
        B_pad = h_all.shape[0]

        layer_in = x_ref[...]                               # (B_pad, in_dim_0) f32
        h_news, c_news = [], []
        for layer in range(num_layers):
            w_ref = layer_refs[2 * layer]      # (in_dim+2H, 8H) bf16, i/f/o cols pre-scaled 0.5
            b_ref = layer_refs[2 * layer + 1]  # (1, 8H) f32, same pre-scale

            h_prev = h_all[:, layer * H2:(layer + 1) * H2]  # (B_pad, 2H) = [h_fwd|h_bwd]
            c_prev = c_all[:, layer * H2:(layer + 1) * H2]

            # Single 8H-wide fused gate matmul covering input + hidden and both directions.
            lhs = jnp.concatenate([layer_in, h_prev], axis=-1).astype(jnp.bfloat16)
            gates = (jnp.dot(lhs, w_ref[...], preferred_element_type=jnp.float32)
                     + b_ref[...])                          # (B_pad, 8H) f32

            # One full-width tanh (EUP) + one full-width affine (VPU):
            #   sigmoid(x) = 0.5*tanh(x/2) + 0.5 ; the 0.5 scaling of x is folded into W/b.
            t = jnp.tanh(gates)
            a = 0.5 * t + 0.5
            i_g = a[:, 0 * H2:1 * H2]
            f_g = a[:, 1 * H2:2 * H2]
            g_g = t[:, 2 * H2:3 * H2]                       # g gate columns were NOT pre-scaled
            o_g = a[:, 3 * H2:4 * H2]

            c_new = f_g * c_prev + i_g * g_g                # (B_pad, 2H) f32
            h_new = o_g * jnp.tanh(c_new)
            h_news.append(h_new)
            c_news.append(c_new)
            layer_in = h_new                                # next layer input = [fwd|bwd]

        # Lane-dense single-store state writeback.
        if st_pad > ST:
            pad = jnp.zeros((B_pad, st_pad - ST), jnp.float32)
            h_news = h_news + [pad]
            c_news = c_news + [pad]
        h_out_ref[...] = jnp.concatenate(h_news, axis=-1)
        c_out_ref[...] = jnp.concatenate(c_news, axis=-1)

        # Fused Linear head, written into a 128-lane padded slab (lane-dense store).
        pred_ref[...] = (jnp.dot(layer_in.astype(jnp.bfloat16), lin_w_ref[...],
                                 preferred_element_type=jnp.float32)
                         + lin_b_ref[...])

    return kernel


@partial(jax.jit,
         static_argnames=("input_size", "hidden_size", "num_layers", "output_size"))
def _decoder_forward(params, input_seq, h, c, *,
                     input_size, hidden_size, num_layers, output_size):
    B = input_seq.shape[0]
    H = hidden_size
    L = num_layers
    H2 = 2 * H
    ST = L * H2
    ST_pad = _round_up(ST, 128)
    B_pad = _round_up(B, 8)                      # pack sublanes (8 rows per vreg)
    OUT_pad = params["lin_w"].shape[1]           # 128-lane padded Linear output width

    x = input_seq.reshape(B, input_size)
    x_pad = jnp.zeros((B_pad, input_size), jnp.float32).at[:B].set(x)

    def to_state(s):
        # (2L, B, H) -> (B_pad, ST_pad); layer l at cols [l*2H : (l+1)*2H], fwd then bwd.
        s = s.reshape(L, 2, B, H).transpose(2, 0, 1, 3).reshape(B, ST)
        return jnp.zeros((B_pad, ST_pad), jnp.float32).at[:B, :ST].set(s)

    h_st = to_state(h)
    c_st = to_state(c)

    args = [x_pad, h_st, c_st]
    for layer in range(L):
        args += [params["w"][layer], params["b"][layer]]
    args += [params["lin_w"], params["lin_b"]]
    n_in = len(args)

    vmem = pl.BlockSpec(memory_space=pltpu.MemorySpace.VMEM)
    pred_pad, h_out_st, c_out_st = pl.pallas_call(
        _make_fused_kernel(L, H, ST_pad),
        out_shape=(jax.ShapeDtypeStruct((B_pad, OUT_pad), jnp.float32),
                   jax.ShapeDtypeStruct((B_pad, ST_pad), jnp.float32),
                   jax.ShapeDtypeStruct((B_pad, ST_pad), jnp.float32)),
        in_specs=[vmem] * n_in,
        out_specs=(vmem, vmem, vmem),
        # Update h/c state in place across decode steps (h_st -> h_out, c_st -> c_out).
        input_output_aliases={1: 1, 2: 2},
    )(*args)

    def from_state(s):
        # (B_pad, ST_pad) -> (2L, B, H)
        return (s[:B, :ST].reshape(B, L, 2, H)
                .transpose(1, 2, 0, 3).reshape(2 * L, B, H))

    pred = pred_pad[:B, :output_size]
    return pred, from_state(h_out_st), from_state(c_out_st)


# --------------------------------------------------------------------------- #
# Decoder module (parameters + forward glue)
# --------------------------------------------------------------------------- #
class Decoder:
    def __init__(self, input_size, hidden_size, num_layers, output_size,
                 batch_size, key):
        self.input_size = input_size
        self.hidden_size = hidden_size
        self.num_layers = num_layers
        self.output_size = output_size
        self.batch_size = batch_size

        H = hidden_size
        H2 = 2 * H
        bound = 1.0 / (H ** 0.5)  # PyTorch default LSTM init range

        def uni(k, shape):
            return jax.random.uniform(k, shape, jnp.float32, -bound, bound)

        # Raw per-direction PyTorch-layout weights (kept for the pure-JAX reference).
        self.raw = {"layers": []}
        w_list, b_list = [], []
        for layer in range(num_layers):
            in_dim = input_size if layer == 0 else 2 * H
            dirs = []
            for _ in range(2):  # 0 = forward, 1 = backward
                key, k1, k2, k3, k4 = jax.random.split(key, 5)
                dirs.append({
                    "w_ih": uni(k1, (4 * H, in_dim)),   # (4H, in)  rows [i; f; g; o]
                    "w_hh": uni(k2, (4 * H, H)),
                    "b_ih": uni(k3, (4 * H,)),
                    "b_hh": uni(k4, (4 * H,)),
                })
            self.raw["layers"].append(dirs)

            # Fused kernel layout.  Gate columns gate-major / direction-minor: block index
            # (2*g + d) of width H, g in [i,f,g,o], d in [fwd,bwd].  Input and hidden weights
            # stacked row-wise so one [x | h_fwd | h_bwd] @ W dot produces all gates.
            w_stk = jnp.zeros((in_dim + 2 * H, 8 * H), jnp.float32)
            bias_cols = []
            for g in range(4):
                for d in range(2):
                    blk = 2 * g + d
                    w_ih_g = dirs[d]["w_ih"][g * H:(g + 1) * H, :]       # (H, in_dim)
                    w_hh_g = dirs[d]["w_hh"][g * H:(g + 1) * H, :]       # (H, H)
                    w_stk = w_stk.at[:in_dim, blk * H:(blk + 1) * H].set(
                        jnp.transpose(w_ih_g))
                    w_stk = w_stk.at[in_dim + d * H:in_dim + (d + 1) * H,
                                     blk * H:(blk + 1) * H].set(jnp.transpose(w_hh_g))
                    bias_cols.append(dirs[d]["b_ih"][g * H:(g + 1) * H]
                                     + dirs[d]["b_hh"][g * H:(g + 1) * H])
            bias = jnp.concatenate(bias_cols).reshape(1, 8 * H)

            # Fold sigmoid into tanh: pre-scale i/f/o gate columns (and bias) by 0.5 so the
            # kernel only needs one full-width tanh.  g gate columns stay unscaled.
            scale = (jnp.ones((8 * H,), jnp.float32)
                     .at[0:2 * H2].set(0.5)          # i, f
                     .at[3 * H2:4 * H2].set(0.5))    # o
            w_stk = w_stk * scale
            bias = bias * scale

            w_list.append(w_stk.astype(jnp.bfloat16))   # bf16 MXU operand
            b_list.append(bias)                         # f32 VPU add

        # Linear(2H -> output_size), lane-padded to a multiple of 128 output columns.
        key, k1, k2 = jax.random.split(key, 3)
        lb = 1.0 / ((2 * H) ** 0.5)
        w_lin = jax.random.uniform(k1, (output_size, 2 * H), jnp.float32, -lb, lb)
        b_lin = jax.random.uniform(k2, (output_size,), jnp.float32, -lb, lb)
        out_pad = _round_up(output_size, 128)
        lin_w = jnp.zeros((2 * H, out_pad), jnp.float32).at[:, :output_size].set(
            jnp.transpose(w_lin)).astype(jnp.bfloat16)
        lin_b = jnp.zeros((1, out_pad), jnp.float32).at[:, :output_size].set(b_lin)
        self.raw["lin_w"] = w_lin
        self.raw["lin_b"] = b_lin

        self.params = {"w": w_list, "b": b_list, "lin_w": lin_w, "lin_b": lin_b}

    def forward(self, input_seq, h, c):
        """input_seq: (B, input_size); h, c: (2*num_layers, B, H).
        Returns (pred (B, output_size), h_out, c_out) matching the PyTorch module."""
        # TODO(synk): the backward direction equals the forward pass only because seq_len==1
        # (as in the PyTorch module's .view(batch, 1, input_size)); longer sequences would
        # need a reversed time loop.
        return _decoder_forward(self.params, input_seq, h, c,
                                input_size=self.input_size,
                                hidden_size=self.hidden_size,
                                num_layers=self.num_layers,
                                output_size=self.output_size)


# --------------------------------------------------------------------------- #
# Pure-JAX f32 reference from the raw PyTorch-layout weights (correctness check)
# --------------------------------------------------------------------------- #
def _reference(dec, x, h, c):
    H = dec.hidden_size
    h_outs, c_outs = [], []
    layer_in = x
    for layer in range(dec.num_layers):
        outs = []
        for d in range(2):
            p = dec.raw["layers"][layer][d]
            idx = 2 * layer + d
            gates = (layer_in @ p["w_ih"].T + h[idx] @ p["w_hh"].T
                     + p["b_ih"] + p["b_hh"])
            i = jax.nn.sigmoid(gates[:, 0 * H:1 * H])
            f = jax.nn.sigmoid(gates[:, 1 * H:2 * H])
            g = jnp.tanh(gates[:, 2 * H:3 * H])
            o = jax.nn.sigmoid(gates[:, 3 * H:4 * H])
            c_new = f * c[idx] + i * g
            h_new = o * jnp.tanh(c_new)
            h_outs.append(h_new)
            c_outs.append(c_new)
            outs.append(h_new)
        layer_in = jnp.concatenate(outs, axis=-1)
    pred = layer_in @ dec.raw["lin_w"].T + dec.raw["lin_b"]
    return pred, jnp.stack(h_outs, 0), jnp.stack(c_outs, 0)


# --------------------------------------------------------------------------- #
if __name__ == "__main__":
    INPUT_SIZE = 16
    HIDDEN_SIZE = 32
    NUM_LAYERS = 2
    OUTPUT_SIZE = 8
    BATCH = 2

    key = jax.random.PRNGKey(0)
    key, kp, kx, kh, kc = jax.random.split(key, 5)

    dec = Decoder(INPUT_SIZE, HIDDEN_SIZE, NUM_LAYERS, OUTPUT_SIZE, BATCH, kp)

    input_seq = jax.random.normal(kx, (BATCH, INPUT_SIZE), jnp.float32)
    h0 = jax.random.normal(kh, (2 * NUM_LAYERS, BATCH, HIDDEN_SIZE), jnp.float32)
    c0 = jax.random.normal(kc, (2 * NUM_LAYERS, BATCH, HIDDEN_SIZE), jnp.float32)

    pred, h_out, c_out = dec.forward(input_seq, h0, c0)
    jax.block_until_ready((pred, h_out, c_out))

    # Sanity check against the pure-JAX f32 reference.  Tolerance is loosened because the
    # kernel's matmul operands are bf16 (f32 accumulation).
    pred_r, h_r, c_r = _reference(dec, input_seq, h0, c0)
    assert pred.shape == (BATCH, OUTPUT_SIZE)
    assert h_out.shape == (2 * NUM_LAYERS, BATCH, HIDDEN_SIZE)
    assert c_out.shape == (2 * NUM_LAYERS, BATCH, HIDDEN_SIZE)
    assert jnp.allclose(pred, pred_r, atol=5e-2)
    assert jnp.allclose(h_out, h_r, atol=5e-2)
    assert jnp.allclose(c_out, c_r, atol=5e-2)

    print("KERNEL_OK")
</pallas_src>

<mosaic_0001>
module attributes {stable_mosaic.version = 11 : i64} {
  func.func @kernel(%arg0: memref<8x16xf32, #tpu.memory_space<vmem>>, %arg1: memref<8x128xf32, #tpu.memory_space<vmem>>, %arg2: memref<8x128xf32, #tpu.memory_space<vmem>>, %arg3: memref<80x256xbf16, #tpu.memory_space<vmem>>, %arg4: memref<1x256xf32, #tpu.memory_space<vmem>>, %arg5: memref<128x256xbf16, #tpu.memory_space<vmem>>, %arg6: memref<1x256xf32, #tpu.memory_space<vmem>>, %arg7: memref<64x128xbf16, #tpu.memory_space<vmem>>, %arg8: memref<1x128xf32, #tpu.memory_space<vmem>>, %arg9: memref<8x128xf32, #tpu.memory_space<vmem>>, %arg10: memref<8x128xf32, #tpu.memory_space<vmem>>, %arg11: memref<8x128xf32, #tpu.memory_space<vmem>>) attributes {dimension_semantics = [], scalar_prefetch = 0 : i64, scratch_operands = 0 : i64, tpu.core_type = #tpu.core_type<tc>} {
    %c0 = arith.constant 0 : index
    %c0_0 = arith.constant 0 : index
    %0 = vector.load %arg1[%c0, %c0_0] : memref<8x128xf32, #tpu.memory_space<vmem>>, vector<8x128xf32>
    %c0_1 = arith.constant 0 : index
    %c0_2 = arith.constant 0 : index
    %1 = vector.load %arg2[%c0_1, %c0_2] : memref<8x128xf32, #tpu.memory_space<vmem>>, vector<8x128xf32>
    %c0_3 = arith.constant 0 : index
    %c0_4 = arith.constant 0 : index
    %2 = vector.load %arg0[%c0_3, %c0_4] : memref<8x16xf32, #tpu.memory_space<vmem>>, vector<8x16xf32>
    %3 = vector.extract_strided_slice %0 {offsets = [0, 0], sizes = [8, 64], strides = [1, 1]} : vector<8x128xf32> to vector<8x64xf32>
    %4 = vector.extract_strided_slice %1 {offsets = [0, 0], sizes = [8, 64], strides = [1, 1]} : vector<8x128xf32> to vector<8x64xf32>
    %5 = tpu.concatenate %2, %3 in 1 : vector<8x16xf32>, vector<8x64xf32> -> vector<8x80xf32>
    %6 = arith.truncf %5 : vector<8x80xf32> to vector<8x80xbf16>
    %c0_5 = arith.constant 0 : index
    %c0_6 = arith.constant 0 : index
    %7 = vector.load %arg3[%c0_5, %c0_6] : memref<80x256xbf16, #tpu.memory_space<vmem>>, vector<80x256xbf16>
    %cst = arith.constant dense<0.000000e+00> : vector<8x256xf32>
    %8 = tpu.matmul %6, %7, %cst {dimension_numbers = #tpu.dot_dimension_numbers<[1], [0], [0], [1], [0, 0, 1, 1], [], []>} : vector<8x80xbf16>, vector<80x256xbf16>, vector<8x256xf32> -> vector<8x256xf32>
    %c0_7 = arith.constant 0 : index
    %c0_8 = arith.constant 0 : index
    %9 = vector.load %arg4[%c0_7, %c0_8] : memref<1x256xf32, #tpu.memory_space<vmem>>, vector<1x256xf32>
    %10 = vector.broadcast %9 : vector<1x256xf32> to vector<8x256xf32>
    %11 = arith.addf %8, %10 : vector<8x256xf32>
    %12 = math.tanh %11 : vector<8x256xf32>
    %cst_9 = arith.constant 5.000000e-01 : f32
    %13 = vector.broadcast %cst_9 : f32 to vector<8x256xf32>
    %14 = arith.mulf %13, %12 : vector<8x256xf32>
    %cst_10 = arith.constant 5.000000e-01 : f32
    %15 = vector.broadcast %cst_10 : f32 to vector<8x256xf32>
    %16 = arith.addf %14, %15 : vector<8x256xf32>
    %17 = vector.extract_strided_slice %16 {offsets = [0, 0], sizes = [8, 64], strides = [1, 1]} : vector<8x256xf32> to vector<8x64xf32>
    %18 = vector.extract_strided_slice %16 {offsets = [0, 64], sizes = [8, 64], strides = [1, 1]} : vector<8x256xf32> to vector<8x64xf32>
    %19 = vector.extract_strided_slice %12 {offsets = [0, 128], sizes = [8, 64], strides = [1, 1]} : vector<8x256xf32> to vector<8x64xf32>
    %20 = vector.extract_strided_slice %16 {offsets = [0, 192], sizes = [8, 64], strides = [1, 1]} : vector<8x256xf32> to vector<8x64xf32>
    %21 = arith.mulf %18, %4 : vector<8x64xf32>
    %22 = arith.mulf %17, %19 : vector<8x64xf32>
    %23 = arith.addf %21, %22 : vector<8x64xf32>
    %24 = math.tanh %23 : vector<8x64xf32>
    %25 = arith.mulf %20, %24 : vector<8x64xf32>
    %26 = vector.extract_strided_slice %0 {offsets = [0, 64], sizes = [8, 64], strides = [1, 1]} : vector<8x128xf32> to vector<8x64xf32>
    %27 = vector.extract_strided_slice %1 {offsets = [0, 64], sizes = [8, 64], strides = [1, 1]} : vector<8x128xf32> to vector<8x64xf32>
    %28 = tpu.concatenate %25, %26 in 1 : vector<8x64xf32>, vector<8x64xf32> -> vector<8x128xf32>
    %29 = arith.truncf %28 : vector<8x128xf32> to vector<8x128xbf16>
    %c0_11 = arith.constant 0 : index
    %c0_12 = arith.constant 0 : index
    %30 = vector.load %arg5[%c0_11, %c0_12] : memref<128x256xbf16, #tpu.memory_space<vmem>>, vector<128x256xbf16>
    %cst_13 = arith.constant dense<0.000000e+00> : vector<8x256xf32>
    %31 = tpu.matmul %29, %30, %cst_13 {dimension_numbers = #tpu.dot_dimension_numbers<[1], [0], [0], [1], [0, 0, 1, 1], [], []>} : vector<8x128xbf16>, vector<128x256xbf16>, vector<8x256xf32> -> vector<8x256xf32>
    %c0_14 = arith.constant 0 : index
    %c0_15 = arith.constant 0 : index
    %32 = vector.load %arg6[%c0_14, %c0_15] : memref<1x256xf32, #tpu.memory_space<vmem>>, vector<1x256xf32>
    %33 = vector.broadcast %32 : vector<1x256xf32> to vector<8x256xf32>
    %34 = arith.addf %31, %33 : vector<8x256xf32>
    %35 = math.tanh %34 : vector<8x256xf32>
    %cst_16 = arith.constant 5.000000e-01 : f32
    %36 = vector.broadcast %cst_16 : f32 to vector<8x256xf32>
    %37 = arith.mulf %36, %35 : vector<8x256xf32>
    %cst_17 = arith.constant 5.000000e-01 : f32
    %38 = vector.broadcast %cst_17 : f32 to vector<8x256xf32>
    %39 = arith.addf %37, %38 : vector<8x256xf32>
    %40 = vector.extract_strided_slice %39 {offsets = [0, 0], sizes = [8, 64], strides = [1, 1]} : vector<8x256xf32> to vector<8x64xf32>
    %41 = vector.extract_strided_slice %39 {offsets = [0, 64], sizes = [8, 64], strides = [1, 1]} : vector<8x256xf32> to vector<8x64xf32>
    %42 = vector.extract_strided_slice %35 {offsets = [0, 128], sizes = [8, 64], strides = [1, 1]} : vector<8x256xf32> to vector<8x64xf32>
    %43 = vector.extract_strided_slice %39 {offsets = [0, 192], sizes = [8, 64], strides = [1, 1]} : vector<8x256xf32> to vector<8x64xf32>
    %44 = arith.mulf %41, %27 : vector<8x64xf32>
    %45 = arith.mulf %40, %42 : vector<8x64xf32>
    %46 = arith.addf %44, %45 : vector<8x64xf32>
    %47 = math.tanh %46 : vector<8x64xf32>
    %48 = arith.mulf %43, %47 : vector<8x64xf32>
    %49 = tpu.concatenate %25, %48 in 1 : vector<8x64xf32>, vector<8x64xf32> -> vector<8x128xf32>
    %c0_18 = arith.constant 0 : index
    %c0_19 = arith.constant 0 : index
    %50 = vector.load %arg10[%c0_18, %c0_19] : memref<8x128xf32, #tpu.memory_space<vmem>>, vector<8x128xf32>
    tpu.vector_store %arg10[%c0_18, %c0_19], %49 {strides = array<i32>} : memref<8x128xf32, #tpu.memory_space<vmem>>, vector<8x128xf32>,
    %51 = tpu.concatenate %23, %46 in 1 : vector<8x64xf32>, vector<8x64xf32> -> vector<8x128xf32>
    %c0_20 = arith.constant 0 : index
    %c0_21 = arith.constant 0 : index
    %52 = vector.load %arg11[%c0_20, %c0_21] : memref<8x128xf32, #tpu.memory_space<vmem>>, vector<8x128xf32>
    tpu.vector_store %arg11[%c0_20, %c0_21], %51 {strides = array<i32>} : memref<8x128xf32, #tpu.memory_space<vmem>>, vector<8x128xf32>,
    %53 = arith.truncf %48 : vector<8x64xf32> to vector<8x64xbf16>
    %c0_22 = arith.constant 0 : index
    %c0_23 = arith.constant 0 : index
    %54 = vector.load %arg7[%c0_22, %c0_23] : memref<64x128xbf16, #tpu.memory_space<vmem>>, vector<64x128xbf16>
    %cst_24 = arith.constant dense<0.000000e+00> : vector<8x128xf32>
    %55 = tpu.matmul %53, %54, %cst_24 {dimension_numbers = #tpu.dot_dimension_numbers<[1], [0], [0], [1], [0, 0, 1, 1], [], []>} : vector<8x64xbf16>, vector<64x128xbf16>, vector<8x128xf32> -> vector<8x128xf32>
    %c0_25 = arith.constant 0 : index
    %c0_26 = arith.constant 0 : index
    %56 = vector.load %arg8[%c0_25, %c0_26] : memref<1x128xf32, #tpu.memory_space<vmem>>, vector<1x128xf32>
    %57 = vector.broadcast %56 : vector<1x128xf32> to vector<8x128xf32>
    %58 = arith.addf %55, %57 : vector<8x128xf32>
    %c0_27 = arith.constant 0 : index
    %c0_28 = arith.constant 0 : index
    %59 = vector.load %arg9[%c0_27, %c0_28] : memref<8x128xf32, #tpu.memory_space<vmem>>, vector<8x128xf32>
    tpu.vector_store %arg9[%c0_27, %c0_28], %58 {strides = array<i32>} : memref<8x128xf32, #tpu.memory_space<vmem>>, vector<8x128xf32>,
    return
  }
}

</mosaic_0001>

<bundles_post_ra>
// kernel: _decoder_forward.1
= control target key start
LH: loop header
LB: loop body
LE: loop exit
PB: predicated region body
PF: predicated region fallthrough
CT: control target
= control target key end

     0   :  { %17 = vsyncpa [#allocation3], 0  ;;  %s836_s0 = inlined_call_operand.vmem [shape: f32[8,16], index: 0, kind: input, shape index: {}]   ;;  %s837_s1 = inlined_call_operand.vmem [shape: f32[8,128], index: 1, kind: input, shape index: {}, may-alias: {1,10}]   ;;  %s838_s2 = inlined_call_operand.vmem [shape: f32[8,128], index: 2, kind: input, shape index: {}, may-alias: {2,11}]   ;;  %s839_s3 = inlined_call_operand.vmem [shape: bf16[80,256], index: 3, kind: input, shape index: {}]   ;;  %s840_s4 = inlined_call_operand.vmem [shape: f32[1,256], index: 4, kind: input, shape index: {}]   ;;  %s841_s5 = inlined_call_operand.hbm [shape: bf16[128,256], index: 5, kind: input, shape index: {}]   ;;  %s842_s6 = inlined_call_operand.vmem [shape: f32[1,256], index: 6, kind: input, shape index: {}]   ;;  %s843_s7 = inlined_call_operand.hbm [shape: bf16[64,128], index: 7, kind: input, shape index: {}]   ;;  %s844_s8 = inlined_call_operand.vmem [shape: f32[1,128], index: 8, kind: input, shape index: {}]   ;;  %s845_s9 = inlined_call_operand.vmem [shape: f32[8,128], index: 9, kind: output, shape index: {0}]   ;;  %s846_s10 = inlined_call_operand.vmem [shape: f32[8,128], index: 10, kind: output, shape index: {1}, may-alias: {1,10}]   ;;  %s847_s11 = inlined_call_operand.vmem [shape: f32[8,128], index: 11, kind: output, shape index: {2}, may-alias: {2,11}]  }
   0x1   :  { %18 = vsyncpa [#allocation5], 0  ;;  %s653_s17 = smov [#allocation2]   ;;  %s605_s21 = scalar_lea.hbm %s841_s5, 2048 }
   0x2   :  { %s34_s18 = sshll.u32 %s653_s17, 4  ;;  %p606_p0 = scmp.ne.s32.totalorder %s841_s5, %s605_s21  ;;  %s35_s18 = int_to_ptr.vmem [resolvable:$true] %s34_s18 }
   0x3   :  { %p609_p1 = scmp.lt.u32.totalorder %s605_s21, %s841_s5 }
   0x5   :  { %p611_p2 = pnand %p609_p1, %p606_p0 }
   0x7   :  { %614 = shalt.err (!%p611_p2)
}
   0x8   :  { %s615_s26 = scalar_lea.vmem %s35_s18, 2048  ;;  %p620_p4 = scmp.lt.s32.totalorder %s35_s18, %s35_s18 }
   0x9   :  { %p616_p3 = scmp.ne.s32.totalorder %s35_s18, %s615_s26  ;;  %p621_p5 = scmp.lt.s32.totalorder %s615_s26, %s615_s26 }
   0xb   :  { %p622_p6 = por %p621_p5, %p620_p4 }
   0xd   :  { %p623_p7 = pnand %p622_p6, %p616_p3 }
   0xf   :  { %626 = shalt.err (!%p623_p7)
}
  0x10   :  { %s654_s27 = smov 128   ;;  %s655_s28 = smov 8  }
  0x11   :  { %40 = dma.hbm_to_vmem [thread:$0]  %s841_s5, 2048, %s35_s18, [#allocation3], %s654_s27, %s654_s27, %s655_s28  }
  0x12   :  { %s656_s12 = smov [#allocation4]   ;;  %s627_s16 = scalar_lea.hbm %s843_s7, 512 }
  0x13   :  { %s48_s13 = sshll.u32 %s656_s12, 4  ;;  %p628_p8 = scmp.ne.s32.totalorder %s843_s7, %s627_s16  ;;  %s49_s13 = int_to_ptr.vmem [resolvable:$true] %s48_s13 }
  0x14   :  { %p631_p9 = scmp.lt.u32.totalorder %s627_s16, %s843_s7 }
  0x16   :  { %p633_p10 = pnand %p631_p9, %p628_p8 }
  0x18   :  { %636 = shalt.err (!%p633_p10)
}
  0x19   :  { %s637_s22 = scalar_lea.vmem %s49_s13, 512  ;;  %p642_p12 = scmp.lt.s32.totalorder %s49_s13, %s49_s13 }
  0x1a   :  { %p638_p11 = scmp.ne.s32.totalorder %s49_s13, %s637_s22  ;;  %p643_p13 = scmp.lt.s32.totalorder %s637_s22, %s637_s22 }
  0x1c   :  { %p644_p0 = por %p643_p13, %p642_p12 }
  0x1e   :  { %p645_p1 = pnand %p644_p0, %p638_p11 }
  0x20   :  { %648 = shalt.err (!%p645_p1)
}
  0x21   :  { %s657_s5 = smov 64   ;;  %s658_s18 = smov 4  }
  0x22   :  { %54 = dma.hbm_to_vmem [thread:$0]  %s843_s7, 512, %s49_s13, [#allocation5], %s657_s5, %s657_s5, %s658_s18  }
  0x23   :  { %649 = dma.done.wait [#allocation3], 2048  }
  0x24   :  { %650 = vsyncadd [#allocation3], 4294965248 }
  0x25   :  { %651 = dma.done.wait [#allocation5], 512  }
  0x26   :  { %652 = vsyncadd [#allocation5], 4294966784  ;;  %v659_v0 = vmov 0   ;;  %v752_v1 = vld [vmem:[%s837_s1] sm:$0xff]  ;;  %s660_s27 = smov 16   ;;  %vm71_vm0 = vcmask 130048   ;;  %v86_v17 = vlaneseq }
  0x27   :  { %182 = vmatprep.mubr.bf16.mxu0 %v659_v0  ;;  %357 = vmatprep.mubr.bf16.mxu1 %v659_v0  ;;  %v550_v2 = vld [vmem:[%s839_s3 + $0x4] ss:$8 sps:$4 sm:$0xff]   ;;  %v552_v3 = vld [vmem:[%s839_s3] ss:$8 sps:$4 sm:$0xff]   ;;  %v553_v4 = vld [vmem:[%s839_s3 + $0x14] ss:$8 sps:$4 sm:$0xff]  }
  0x28   :  { %68 = vrot.lane.b32.xlu0 %v752_v1, %s660_s27  ;;  %150 = vmatprep.subr.bf16.mxu0 %v550_v2  ;;  %v555_v5 = vld [vmem:[%s839_s3 + $0x10] ss:$8 sps:$4 sm:$0xff]   ;;  %v556_v6 = vld [vmem:[%s839_s3 + $0x24] ss:$8 sps:$4 sm:$0xff]   ;;  %v558_v7 = vld [vmem:[%s839_s3 + $0x20] ss:$8 sps:$4 sm:$0xff]  }
  0x29   :  { %151 = vmatpush1.bf16.msra.mxu0 %v552_v3  ;;  %v559_v8 = vld [vmem:[%s839_s3 + $0x34] ss:$8 sps:$4 sm:$0xff]   ;;  %v779_v9 = vld [vmem:[%s838_s2] sm:$0xff]  ;;  %v561_v10 = vld [vmem:[%s839_s3 + $0x30] ss:$8 sps:$4 sm:$0xff]   ;;  %vm146_vm1 = vcmask 654336  }
  0x2a   :  { %152 = vmatprep.subr.bf16.mxu0 %v553_v4  ;;  %v562_v11 = vld [vmem:[%s839_s3 + $0x44] ss:$8 sps:$4 sm:$0xff]   ;;  %v564_v12 = vld [vmem:[%s839_s3 + $0x40] ss:$8 sps:$4 sm:$0xff]   ;;  %v795_v18 = vshrl.u32 %v86_v17, 7  ;;  %vm214_vm2 = vcmask 523264  }
  0x2b   :  { %v66_v13 = vld [vmem:[%s836_s0] sm:$0xff]  ;;  %v568_v37 = vld [vmem:[#allocation2 + $0x14] ss:$8 sps:$4 sm:$0xff]   ;;  %v570_v38 = vld [vmem:[#allocation2 + $0x10] ss:$8 sps:$4 sm:$0xff]   ;;  %vm662_vm3 = vmmov 0  }
  0x2c   :  { %198 = vrot.lane.b32.xlu0 %v779_v9, %s657_s5  ;;  %v88_v19 = vsub.s32 0, %v795_v18  ;;  %v84_v20 = vld [vmem:[%s840_s4] sm:$0x3]  ;;  %v92_v21 = vsub.s32 1, %v795_v18  ;;  %v565_v35 = vld [vmem:[#allocation2 + $0x4] ss:$8 sps:$4 sm:$0xff]  }
  0x2d   :  { %153 = vmatpush1.bf16.msra.mxu0 %v555_v5  ;;  %v567_v36 = vld [vmem:[#allocation2] ss:$8 sps:$4 sm:$0xff]   ;;  %325 = vmatprep.subr.bf16.mxu1 %v565_v35  ;;  %v571_v39 = vld [vmem:[#allocation2 + $0x24] ss:$8 sps:$4 sm:$0xff]   ;;  %v574_v41 = vld [vmem:[#allocation2 + $0x34] ss:$8 sps:$4 sm:$0xff]  }
  0x2e   :  { %154 = vmatprep.subr.bf16.mxu0 %v556_v6  ;;  %v89_v22 = vrot.slane %v84_v20, %v88_v19  ;;  %v93_v23 = vrot.slane %v84_v20, %v92_v21  ;;  %326 = vmatpush1.bf16.msra.mxu1 %v567_v36  ;;  %v573_v40 = vld [vmem:[#allocation2 + $0x20] ss:$8 sps:$4 sm:$0xff]   ;;  %v576_v42 = vld [vmem:[#allocation2 + $0x30] ss:$8 sps:$4 sm:$0xff]   ;;  %v577_v43 = vld [vmem:[#allocation2 + $0x44] ss:$8 sps:$4 sm:$0xff]  }
  0x2f   :  { %327 = vmatprep.subr.bf16.mxu1 %v568_v37  ;;  %v579_v44 = vld [vmem:[#allocation2 + $0x40] ss:$8 sps:$4 sm:$0xff]   ;;  %v580_v45 = vld [vmem:[#allocation2 + $0x54] ss:$8 sps:$4 sm:$0xff]   ;;  %v582_v46 = vld [vmem:[#allocation2 + $0x50] ss:$8 sps:$4 sm:$0xff]  }
  0x30   :  { %v583_v47 = vld [vmem:[#allocation2 + $0x64] ss:$8 sps:$4 sm:$0xff]   ;;  %v585_v48 = vld [vmem:[#allocation2 + $0x60] ss:$8 sps:$4 sm:$0xff]   ;;  %v586_v49 = vld [vmem:[#allocation2 + $0x74] ss:$8 sps:$4 sm:$0xff]  }
  0x31   :  { %155 = vmatpush1.bf16.msra.mxu0 %v558_v7  ;;  %v588_v54 = vld [vmem:[#allocation2 + $0x70] ss:$8 sps:$4 sm:$0xff]   ;;  %v233_v62 = vld [vmem:[%s842_s6] sm:$0x3] }
  0x32   :  { %156 = vmatprep.subr.bf16.mxu0 %v559_v8  ;;  %328 = vmatpush1.bf16.msra.mxu1 %v570_v38  ;;  %v238_v63 = vrot.slane %v233_v62, %v88_v19  ;;  %v242_v0 = vrot.slane %v233_v62, %v92_v21  ;;  %v592_v17 = vld [vmem:[#allocation4 + $0x18] sm:$0xff]  }
  0x33   :  { %329 = vmatprep.subr.bf16.mxu1 %v571_v39 }
  0x35   :  { %157 = vmatpush1.bf16.msra.mxu0 %v561_v10 }
  0x36   :  { %158 = vmatprep.subr.bf16.mxu0 %v562_v11  ;;  %330 = vmatpush1.bf16.msra.mxu1 %v573_v40 }
  0x37   :  { %331 = vmatprep.subr.bf16.mxu1 %v574_v41 }
  0x39   :  { %159 = vmatpush1.bf16.msra.mxu0 %v564_v12 }
  0x3a   :  { %332 = vmatpush1.bf16.msra.mxu1 %v576_v42 }
  0x3b   :  { %333 = vmatprep.subr.bf16.mxu1 %v577_v43 }
  0x3e   :  { %334 = vmatpush1.bf16.msra.mxu1 %v579_v44 }
  0x3f   :  { %335 = vmatprep.subr.bf16.mxu1 %v580_v45 }
  0x42   :  { %336 = vmatpush1.bf16.msra.mxu1 %v582_v46 }
  0x43   :  { %337 = vmatprep.subr.bf16.mxu1 %v583_v47 }
  0x46   :  { %338 = vmatpush1.bf16.msra.mxu1 %v585_v48 }
  0x47   :  { %339 = vmatprep.subr.bf16.mxu1 %v586_v49 }
  0x4a   :  { %340 = vmatpush1.bf16.msra.mxu1 %v588_v54 }
  0x9a   :  { %v69_v14 = vpop.permute.xlu0 %68 }
  0x9b   :  { %v72_v15 = vsel %vm71_vm0, %v66_v13, %v69_v14  ;;  %v589_v13 = vld [vmem:[#allocation4] sm:$0xff]   ;;  %v661_v14 = vmov 0.0  }
  0x9c   :  { %v73_v16 = vpack.c.bf16 %v72_v15, %v72_v15  ;;  %528 = vmatprep.subr.bf16.mxu0 %v661_v14  ;;  %v590_v15 = vld [vmem:[#allocation4 + $0x8] sm:$0xff]  }
  0x9e   :  { %500 = vmatmul.mubr.msk.bf16.vlgmr.msra.gmra.mrb[0].mxu0 %vm146_vm1, %v73_v16  ;;  %v199_v50 = vpop.permute.xlu0 %198  ;;  %v591_v16 = vld [vmem:[#allocation4 + $0x10] sm:$0xff]  }
  0x9f   :  { %536 = vmatprep.mubr.msk.bf16.mxu0 %vm662_vm3, %v661_v14  ;;  %529 = vmatpush3.bf16.msra.mxu0 %v589_v13 }
  0xa0   :  { %530 = vmatprep.subr.bf16.mxu0 %v661_v14 }
  0xa3   :  { %531 = vmatpush3.bf16.msra.mxu0 %v590_v15 }
  0xa4   :  { %532 = vmatprep.subr.bf16.mxu0 %v661_v14 }
  0xa7   :  { %533 = vmatpush3.bf16.msra.mxu0 %v591_v16 }
  0xa8   :  { %534 = vmatprep.subr.bf16.mxu0 %v661_v14 }
  0xab   :  { %535 = vmatpush3.bf16.msra.mxu0 %v592_v17 }
 0x171   :  { %v184_v24 = vpop.f32.mrb[0].mxu0 }
 0x172   :  { %v185_v25 = vadd.f32 %v184_v24, %v89_v22  ;;  %v186_v26 = vpop.f32.mrb[1].mxu0 }
 0x173   :  { %v188_v27 = vpop.f32.mrb[2].mxu0  ;;  %v187_v28 = vadd.f32 %v186_v26, %v93_v23 }
 0x174   :  { %593 = vtanh.f32 %v185_v25  ;;  %v189_v29 = vpop.f32.mrb[3].mxu0 }
 0x175   :  { %595 = vtanh.f32 %v187_v28  ;;  %v517_v29 = vld [vmem:[%s844_s8] ss:$0 sm:$0xff] }
 0x17e   :  { %v594_v30 = vpop.eup %593 }
 0x17f   :  { %v193_v31 = vmul.f32 0.5, %v594_v30  ;;  %v596_v33 = vpop.eup %595 }
 0x180   :  { %v194_v55 = vmul.f32 0.5, %v596_v33 }
 0x181   :  { %v195_v32 = vadd.f32 0.5, %v193_v31 }
 0x182   :  { %v196_v56 = vadd.f32 0.5, %v194_v55 }
 0x183   :  { %v202_v34 = vmul.f32 %v596_v33, %v195_v32  ;;  %v201_v51 = vmul.f32 %v199_v50, %v195_v32 }
 0x185   :  { %204 = vrot.lane.b32.xlu1 %v202_v34, %s657_s5 }
 0x1f7   :  { %v205_v52 = vpop.permute.xlu1 %204 }
 0x1f8   :  { %v207_v53 = vadd.f32 %v205_v52, %v201_v51 }
 0x1fa   :  { %597 = vtanh.f32 %v207_v53 }
 0x204   :  { %v598_v57 = vpop.eup %597 }
 0x205   :  { %v209_v58 = vmul.f32 %v598_v57, %v196_v56 }
 0x207   :  { %211 = vrot.lane.b32.xlu1 %v209_v58, %s657_s5 }
 0x279   :  { %v212_v59 = vpop.permute.xlu1 %211 }
 0x27a   :  { %v215_v60 = vsel %vm214_vm2, %v212_v59, %v752_v1 }
 0x27b   :  { %v216_v61 = vpack.c.bf16 %v215_v60, %v215_v60 }
 0x27d   :  { %358 = vmatmul.mubr.bf16.vlgmr.msra.gmra.mrb[0].mxu1 %v216_v61 }
 0x350   :  { %v359_v2 = vpop.f32.mrb[0].mxu1 }
 0x351   :  { %v360_v3 = vadd.f32 %v359_v2, %v238_v63  ;;  %v361_v4 = vpop.f32.mrb[1].mxu1 }
 0x352   :  { %v363_v5 = vpop.f32.mrb[2].mxu1  ;;  %v362_v6 = vadd.f32 %v361_v4, %v242_v0 }
 0x353   :  { %599 = vtanh.f32 %v360_v3  ;;  %v364_v7 = vpop.f32.mrb[3].mxu1 }
 0x354   :  { %601 = vtanh.f32 %v362_v6 }
 0x35d   :  { %v600_v1 = vpop.eup %599 }
 0x35e   :  { %v368_v8 = vmul.f32 0.5, %v600_v1  ;;  %v602_v11 = vpop.eup %601 }
 0x35f   :  { %v369_v23 = vmul.f32 0.5, %v602_v11 }
 0x360   :  { %v370_v10 = vadd.f32 0.5, %v368_v8 }
 0x361   :  { %v371_v24 = vadd.f32 0.5, %v369_v23 }
 0x362   :  { %v373_v12 = vmul.f32 %v602_v11, %v370_v10  ;;  %v372_v18 = vmul.f32 %v370_v10, %v779_v9 }
 0x364   :  { %375 = vrot.lane.b32.xlu0 %v373_v12, %s657_s5 }
 0x368   :  { %384 = vrot.lane.b32.xlu0 %v207_v53, %s657_s5 }
 0x3d6   :  { %v376_v19 = vpop.permute.xlu0 %375 }
 0x3d7   :  { %v378_v20 = vadd.f32 %v376_v19, %v372_v18 }
 0x3d9   :  { %603 = vtanh.f32 %v378_v20 }
 0x3da   :  { %v385_v21 = vpop.permute.xlu0 %384 }
 0x3db   :  { %v387_v22 = vsel %vm214_vm2, %v385_v21, %v378_v20 }
 0x3dc   :  { %388 = vst [vmem:[%s847_s11] sm:$0xff] %v387_v22 }
 0x3e3   :  { %v604_v25 = vpop.eup %603 }
 0x3e4   :  { %v380_v26 = vmul.f32 %v604_v25, %v371_v24 }
 0x3e6   :  { %v389_v27 = vpack.c.bf16 %v380_v26, %v380_v26  ;;  %v381_v28 = vsel %vm214_vm2, %v212_v59, %v380_v26 }
 0x3e7   :  { %382 = vst [vmem:[%s846_s10] sm:$0xff] %v381_v28 }
 0x3e8   :  { %406 = vrot.lane.b32.xlu1 %v389_v27, %s657_s5 }
 0x45a   :  { %v407_v9 = vpop.permute.xlu1 %406 }
 0x45b   :  { %537 = vmatmul.mubr.msk.bf16.vlgmr.msra.gmra.mrb[4].mxu0 %vm214_vm2, %v407_v9 }
 0x52e   :  { %v469_v30 = vpop.f32.mrb[4].mxu0 }
 0x52f   :  { %v470_v31 = vadd.f32 %v517_v29, %v469_v30  ;;  %v538_v32 = vpop.f32.mrb[5].mxu0 }
 0x530   :  { %v472_v33 = vpop.f32.mrb[6].mxu0 }
 0x531   :  { %475 = vst [vmem:[%s845_s9] sm:$0xff] %v470_v31  ;;  %v539_v34 = vpop.f32.mrb[7].mxu0 }
 0x532   :  { %488 = vsyncpa [#allocation3], 1 }
 0x533   :  { %489 = vsyncpa [#allocation5], 1 }

</bundles_post_ra>
